<compile_context>
chip_gen: v7x
topology: tpu7x:2x2x1
jax: 0.10.0
libtpu: 0.0.40
codegen_flags: <defaults>
</compile_context>

<pallas_src>
import functools
import math

import jax
import jax.numpy as jnp
from jax.experimental import pallas as pl
from jax.experimental.pallas import tpu as pltpu


def _equal_conv2d_kernel(x_ref, w_ref, b_ref, o_ref, xe_ref, *patch_scratch,
                         H, W, KH, KW, padw, neg_slope, apply_act,
                         use_im2col, compute_dtype):
    """One batch element per grid step.

    x_ref:   (1, Cin, H*W)          flattened image (input dtype)
    w_ref:   (Cout, KH*KW*Cin)      im2col path  (pre-scaled, compute_dtype)
             (KH*KW, Cout, Cin)     per-tap path (pre-scaled, compute_dtype)
    b_ref:   (Cout, 1)              bias (f32)
    o_ref:   (1, Cout, H*W)         output (lane-dense stores)
    xe_ref:  (Cin, padw+H*W+padw)   VMEM scratch: zero-haloed flat image
    patch_scratch: (KH*KW*Cin, H*W) VMEM scratch: im2col patches (im2col only)
    """
    Cin = x_ref.shape[1]
    Cout = o_ref.shape[1]
    HW = H * W

    # 1) Refresh only the zero halos; the interior is fully overwritten below.
    #    (Halos are re-zeroed every step -- not just at program_id == 0 -- so
    #    the kernel stays correct when the "parallel" batch axis is split
    #    across TensorCores, each with its own scratch.)
    zeros_halo = jnp.zeros((Cin, padw), compute_dtype)
    xe_ref[:, :padw] = zeros_halo
    xe_ref[:, padw + HW:] = zeros_halo
    xe_ref[:, padw:padw + HW] = x_ref[0].astype(compute_dtype)

    # 2) Hoisted w-edge masks (one compare each, (1, HW), broadcast over Cin).
    w_idx = jax.lax.broadcasted_iota(jnp.int32, (1, HW), 1) % W
    mask_l = w_idx >= 1          # tap column offset -1 stays inside the row
    mask_r = w_idx < (W - 1)     # tap column offset +1 stays inside the row

    def tap_slice(kh, kw):
        # Rows of tap (kh, kw):  x[ci, h+kh-1, w+kw-1]  (0 when out of image).
        # h-direction OOB reads land in the zero halo; w-direction wrap-around
        # reads are masked to zero.
        dk = (kh - 1) * W + (kw - 1)
        s = xe_ref[:, padw + dk:padw + dk + HW]          # (Cin, HW)
        if kw == 0:
            s = jnp.where(mask_l, s, jnp.zeros_like(s))
        elif kw == 2:
            s = jnp.where(mask_r, s, jnp.zeros_like(s))
        return s

    if use_im2col:
        # 3a) Small-Cin path: build the (KH*KW*Cin, HW) patch matrix once and
        #     issue a single big-K MXU matmul with f32 accumulation.
        patch_ref = patch_scratch[0]
        for kh in range(KH):
            for kw in range(KW):
                row0 = (kh * KW + kw) * Cin              # sublane-aligned (Cin % 8 == 0)
                patch_ref[row0:row0 + Cin, :] = tap_slice(kh, kw)
        acc = jnp.dot(w_ref[...], patch_ref[...],
                      preferred_element_type=jnp.float32)          # (Cout, HW) f32
    else:
        # 3b) Large-Cin path (v7x-friendly): no patch materialization; nine
        #     accumulating K=Cin dots directly on the shifted halo slices.
        acc = jnp.zeros((Cout, HW), jnp.float32)
        for kh in range(KH):
            for kw in range(KW):
                acc = acc + jnp.dot(w_ref[kh * KW + kw], tap_slice(kh, kw),
                                    preferred_element_type=jnp.float32)

    # 4) Epilogue: LeakyReLU, then bias (module adds bias AFTER the act).
    #    The EqualConv scale is already folded into w_ref in the wrapper.
    if apply_act:
        acc = jnp.where(acc > 0, acc, neg_slope * acc)
    acc = acc + b_ref[...]                                         # (Cout,1) bcast
    o_ref[0] = acc.astype(o_ref.dtype)


def equal_conv2d(x_nchw, weight_oikk, bias_o=None, *, stride=1, padding=1,
                 activation=True, neg_slope=0.2,
                 compute_dtype=jnp.bfloat16, use_im2col=None):
    """EqualConv2d forward.  x_nchw: (N, Cin, H, W) -> (N, Cout, H, W)."""
    N, Cin, H, W = x_nchw.shape
    Cout, Cin_w, KH, KW = weight_oikk.shape
    assert Cin == Cin_w
    # Only the configuration the module actually uses is wired up.
    # TODO(synk): general stride / padding / kernel-size paths.
    assert stride == 1 and padding == 1 and KH == 3 and KW == 3, (
        "kernel implements the module's default stride=1, padding=1, 3x3 config")

    # Module scale: 1/sqrt(fan_in), fan_in = Cin*KH*KW + 1e-8 (exactly as in
    # the PyTorch module -- no Kaiming sqrt(2) gain).  Uses the ORIGINAL Cin.
    scale = 1.0 / math.sqrt(Cin * KH * KW + 1e-08)

    if bias_o is None:                                  # bias=False configuration
        bias_o = jnp.zeros((Cout,), jnp.float32)

    # Pad Cin up to a multiple of 8 with zero channels (x and weight) so the
    # patch writes / per-tap weight slabs are sublane-aligned.  Zeros keep the
    # numerics unchanged.  Only matters for RGB input layers / toy shapes.
    Cin_pad = ((Cin + 7) // 8) * 8
    if Cin_pad != Cin:
        x_nchw = jnp.pad(x_nchw, ((0, 0), (0, Cin_pad - Cin), (0, 0), (0, 0)))
        weight_oikk = jnp.pad(weight_oikk,
                              ((0, 0), (0, Cin_pad - Cin), (0, 0), (0, 0)))

    HW = H * W
    KKC = KH * KW * Cin_pad

    # Path selection: one big-K im2col matmul for small Cin; once Cin alone
    # already matches the MXU depth, skip the patch scratch entirely.
    if use_im2col is None:
        use_im2col = Cin_pad < 256

    x_flat = x_nchw.reshape(N, Cin_pad, HW)

    # Scale folded into the wrapper-side weight repack (the transpose/reshape
    # materializes a copy anyway, so the multiply is free) and cast to the
    # matmul operand dtype (bf16 by default; f32 accumulation in-kernel).
    w_scaled = weight_oikk.astype(jnp.float32) * scale
    if use_im2col:
        wmat = jnp.transpose(w_scaled, (0, 2, 3, 1)).reshape(Cout, KKC)
        wmat = wmat.astype(compute_dtype)
        w_spec = pl.BlockSpec((Cout, KKC), lambda n: (0, 0))
    else:
        wmat = jnp.transpose(w_scaled, (2, 3, 0, 1)).reshape(KH * KW, Cout, Cin_pad)
        wmat = wmat.astype(compute_dtype)
        w_spec = pl.BlockSpec((KH * KW, Cout, Cin_pad), lambda n: (0, 0, 0))
    # TODO(synk): pipeline_mode=pl.Buffered(1) on the grid-invariant weight and
    # bias specs would reclaim their redundant second pipeline buffer (matters
    # most under v7x's 64 MiB VMEM).

    b = bias_o.reshape(Cout, 1).astype(jnp.float32)

    # Zero-halo width: >= W+1 (covers every 3x3 tap shift) and a multiple of
    # 128 so the interior copy / shifted reads stay lane-friendly.
    padw = ((W + 1 + 127) // 128) * 128

    scratch = [pltpu.VMEM((Cin_pad, 2 * padw + HW), compute_dtype)]  # haloed image
    if use_im2col:
        scratch.append(pltpu.VMEM((KKC, HW), compute_dtype))         # im2col patches

    kernel = functools.partial(
        _equal_conv2d_kernel, H=H, W=W, KH=KH, KW=KW, padw=padw,
        neg_slope=neg_slope, apply_act=activation,
        use_im2col=use_im2col, compute_dtype=compute_dtype)

    itemsize = jnp.dtype(x_nchw.dtype).itemsize
    cost = pl.CostEstimate(
        flops=2 * N * Cout * KKC * HW,
        transcendentals=0,
        bytes_accessed=int(x_flat.size * itemsize
                           + wmat.size * jnp.dtype(compute_dtype).itemsize
                           + b.size * 4
                           + N * Cout * HW * itemsize),
    )

    out_flat = pl.pallas_call(
        kernel,
        out_shape=jax.ShapeDtypeStruct((N, Cout, HW), x_nchw.dtype),
        grid_spec=pltpu.PrefetchScalarGridSpec(
            num_scalar_prefetch=0,
            grid=(N,),
            in_specs=[
                pl.BlockSpec((1, Cin_pad, HW), lambda n: (n, 0, 0)),
                w_spec,                                      # grid-invariant
                pl.BlockSpec((Cout, 1), lambda n: (0, 0)),   # grid-invariant
            ],
            out_specs=pl.BlockSpec((1, Cout, HW), lambda n: (n, 0, 0)),
            scratch_shapes=scratch,
        ),
        compiler_params=pltpu.CompilerParams(
            dimension_semantics=("parallel",),    # batch axis feeds v7x's 2 TCs
            # TODO(synk): raise per-generation for large shapes (v5e/v6e have
            # 128 MiB physical VMEM; v7x 64 MiB).
            vmem_limit_bytes=32 * 1024 * 1024,
        ),
        cost_estimate=cost,
    )(x_flat, wmat, b)

    # TODO(synk): for big generation shapes add an HW-row-tile grid axis (with a
    # (KH-1)-row halo re-sliced from xe) and mark it "parallel" too, so batch-1
    # inference still fills both v7x TensorCores; the per-tap path already
    # removes the 9x patch scratch that would otherwise exceed 64 MiB VMEM.
    # TODO(synk): several-images-per-step batching for tiny 4x4/8x8 layers
    # (restores lane-dense stores, amortizes the ~0.35us/step pipeline cost).
    # TODO(synk): optionally DMA the image straight into xe's interior
    # (memory_space=pl.ANY + make_async_copy) to drop the VMEM->VMEM copy.
    return out_flat.reshape(N, Cout, H, W)


def _reference(x_nchw, weight_oikk, bias_o, *, neg_slope=0.2,
               operand_dtype=jnp.float32):
    """Pure-JAX reference mirroring the PyTorch forward, for sanity checking."""
    Cout, Cin, KH, KW = weight_oikk.shape
    scale = 1.0 / math.sqrt(Cin * KH * KW + 1e-08)
    xp = jnp.pad(x_nchw, ((0, 0), (0, 0), (1, 1), (1, 1))).astype(operand_dtype)
    w = (weight_oikk * scale).astype(operand_dtype)
    out = jax.lax.conv_general_dilated(
        xp, w, window_strides=(1, 1), padding="VALID",
        dimension_numbers=("NCHW", "OIHW", "NCHW"),
        preferred_element_type=jnp.float32)
    out = jnp.where(out > 0, out, neg_slope * out)
    out = out + bias_o.reshape(1, Cout, 1, 1)
    return out.astype(x_nchw.dtype)


if __name__ == "__main__":
    # Deterministic setup, small shapes: N=2, Cin=4, Cout=8, H=W=16, kernel=3.
    key = jax.random.PRNGKey(0)
    kx, kw = jax.random.split(key)
    N, Cin, Cout, H, W, K = 2, 4, 8, 16, 16, 3
    x = jax.random.normal(kx, (N, Cin, H, W), dtype=jnp.float32)
    weight = jax.random.normal(kw, (Cout, Cin, K, K), dtype=jnp.float32)
    bias = jnp.zeros((Cout,), dtype=jnp.float32)      # bias_init = 0.0

    ref_f32 = jax.block_until_ready(_reference(x, weight, bias))

    # Exact-parity check: f32 operands, im2col path (auto-selected for small Cin).
    out_f32 = jax.block_until_ready(
        equal_conv2d(x, weight, bias, compute_dtype=jnp.float32))
    assert out_f32.shape == (N, Cout, H, W)
    err = float(jnp.max(jnp.abs(out_f32 - ref_f32)))
    assert jnp.allclose(out_f32, ref_f32, atol=1e-4, rtol=1e-4), f"im2col f32 max_err={err}"

    # Per-tap (no patch materialization) path -- the large-Cin / v7x formulation.
    out_tap = jax.block_until_ready(
        equal_conv2d(x, weight, bias, compute_dtype=jnp.float32, use_im2col=False))
    err = float(jnp.max(jnp.abs(out_tap - ref_f32)))
    assert jnp.allclose(out_tap, ref_f32, atol=1e-4, rtol=1e-4), f"per-tap f32 max_err={err}"

    # Default bf16-operand / f32-accumulation path vs a bf16-operand reference.
    out_bf16 = jax.block_until_ready(equal_conv2d(x, weight, bias))
    ref_bf16 = jax.block_until_ready(
        _reference(x, weight, bias, operand_dtype=jnp.bfloat16))
    err = float(jnp.max(jnp.abs(out_bf16 - ref_bf16)))
    assert jnp.allclose(out_bf16, ref_bf16, atol=2e-3, rtol=2e-3), f"bf16 max_err={err}"

    print("KERNEL_OK")
</pallas_src>

<mosaic_0001>
module attributes {stable_mosaic.version = 11 : i64} {
  func.func @_equal_conv2d_kernel(%arg0: i32, %arg1: memref<1x8x256xf32, #tpu.memory_space<vmem>>, %arg2: memref<8x72xf32, #tpu.memory_space<vmem>>, %arg3: memref<8x1xf32, #tpu.memory_space<vmem>>, %arg4: memref<1x8x256xf32, #tpu.memory_space<vmem>>, %arg5: memref<8x512xf32, #tpu.memory_space<vmem>>, %arg6: memref<72x256xf32, #tpu.memory_space<vmem>>) attributes {dimension_semantics = [#tpu.dimension_semantics<parallel>], iteration_bounds = array<i64: 2>, scalar_prefetch = 0 : i64, scratch_operands = 2 : i64, tpu.core_type = #tpu.core_type<tc>, window_params = [{transform_indices = @transform_0, window_bounds = array<i64: 1, 8, 256>}, {pipeline_mode = #tpu.pipeline_mode<synchronous>, transform_indices = @transform_1, window_bounds = array<i64: 8, 72>}, {pipeline_mode = #tpu.pipeline_mode<synchronous>, transform_indices = @transform_2, window_bounds = array<i64: 8, 1>}, {transform_indices = @transform_3, window_bounds = array<i64: 1, 8, 256>}]} {
    %cst = arith.constant 0.000000e+00 : f32
    %0 = vector.broadcast %cst : f32 to vector<8x128xf32>
    %c0 = arith.constant 0 : index
    %c0_0 = arith.constant 0 : index
    %1 = vector.load %arg5[%c0, %c0_0] : memref<8x512xf32, #tpu.memory_space<vmem>>, vector<8x128xf32>
    tpu.vector_store %arg5[%c0, %c0_0], %0 {strides = array<i32>} : memref<8x512xf32, #tpu.memory_space<vmem>>, vector<8x128xf32>,
    %c0_1 = arith.constant 0 : index
    %c384 = arith.constant 384 : index
    %2 = vector.load %arg5[%c0_1, %c384] : memref<8x512xf32, #tpu.memory_space<vmem>>, vector<8x128xf32>
    tpu.vector_store %arg5[%c0_1, %c384], %0 {strides = array<i32>} : memref<8x512xf32, #tpu.memory_space<vmem>>, vector<8x128xf32>,
    %c0_2 = arith.constant 0 : index
    %c0_3 = arith.constant 0 : index
    %c0_4 = arith.constant 0 : index
    %3 = vector.load %arg1[%c0_2, %c0_3, %c0_4] : memref<1x8x256xf32, #tpu.memory_space<vmem>>, vector<1x8x256xf32>
    %4 = vector.shape_cast %3 : vector<1x8x256xf32> to vector<8x256xf32>
    %c0_5 = arith.constant 0 : index
    %c128 = arith.constant 128 : index
    %5 = vector.load %arg5[%c0_5, %c128] : memref<8x512xf32, #tpu.memory_space<vmem>>, vector<8x256xf32>
    tpu.vector_store %arg5[%c0_5, %c128], %4 {strides = array<i32>} : memref<8x512xf32, #tpu.memory_space<vmem>>, vector<8x256xf32>,
    %6 = tpu.iota {dimensions = array<i32: 1>} : vector<1x256xi32>
    %c16_i32 = arith.constant 16 : i32
    %c0_i32 = arith.constant 0 : i32
    %7 = arith.cmpi eq, %c16_i32, %c0_i32 : i32
    %c1_i32 = arith.constant 1 : i32
    %8 = arith.select %7, %c1_i32, %c16_i32 : i32
    %9 = vector.broadcast %8 : i32 to vector<1x256xi32>
    %10 = arith.remsi %6, %9 : vector<1x256xi32>
    %c0_i32_6 = arith.constant 0 : i32
    %11 = vector.broadcast %c0_i32_6 : i32 to vector<1x256xi32>
    %12 = arith.cmpi ne, %10, %11 : vector<1x256xi32>
    %c0_i32_7 = arith.constant 0 : i32
    %13 = vector.broadcast %c0_i32_7 : i32 to vector<1x256xi32>
    %14 = arith.cmpi slt, %10, %13 : vector<1x256xi32>
    %c0_i32_8 = arith.constant 0 : i32
    %15 = arith.cmpi slt, %8, %c0_i32_8 : i32
    %16 = vector.broadcast %15 : i1 to vector<1x256xi1>
    %17 = vector.broadcast %16 : vector<1x256xi1> to vector<1x256xi1>
    %18 = arith.xori %14, %17 : vector<1x256xi1>
    %19 = arith.andi %18, %12 : vector<1x256xi1>
    %20 = vector.broadcast %8 : i32 to vector<1x256xi32>
    %21 = arith.addi %10, %20 : vector<1x256xi32>
    %22 = arith.select %19, %21, %10 : vector<1x256xi1>, vector<1x256xi32>
    %c1_i32_9 = arith.constant 1 : i32
    %23 = vector.broadcast %c1_i32_9 : i32 to vector<1x256xi32>
    %24 = arith.cmpi sge, %22, %23 : vector<1x256xi32>
    %c15_i32 = arith.constant 15 : i32
    %25 = vector.broadcast %c15_i32 : i32 to vector<1x256xi32>
    %26 = arith.cmpi slt, %22, %25 : vector<1x256xi32>
    %c0_10 = arith.constant 0 : index
    %c111 = arith.constant 111 : index
    %27 = vector.load %arg5[%c0_10, %c111] : memref<8x512xf32, #tpu.memory_space<vmem>>, vector<8x256xf32>
    %cst_11 = arith.constant 0.000000e+00 : f32
    %28 = vector.broadcast %cst_11 : f32 to vector<8x256xf32>
    %29 = vector.shape_cast %24 : vector<1x256xi1> to vector<1x256xi1>
    %30 = vector.broadcast %29 : vector<1x256xi1> to vector<8x256xi1>
    %31 = arith.select %30, %27, %28 : vector<8x256xi1>, vector<8x256xf32>
    %c0_12 = arith.constant 0 : index
    %c0_13 = arith.constant 0 : index
    %32 = vector.load %arg6[%c0_12, %c0_13] : memref<72x256xf32, #tpu.memory_space<vmem>>, vector<8x256xf32>
    tpu.vector_store %arg6[%c0_12, %c0_13], %31 {strides = array<i32>} : memref<72x256xf32, #tpu.memory_space<vmem>>, vector<8x256xf32>,
    %c0_14 = arith.constant 0 : index
    %c112 = arith.constant 112 : index
    %33 = vector.load %arg5[%c0_14, %c112] : memref<8x512xf32, #tpu.memory_space<vmem>>, vector<8x256xf32>
    %c8 = arith.constant 8 : index
    %c0_15 = arith.constant 0 : index
    %34 = vector.load %arg6[%c8, %c0_15] : memref<72x256xf32, #tpu.memory_space<vmem>>, vector<8x256xf32>
    tpu.vector_store %arg6[%c8, %c0_15], %33 {strides = array<i32>} : memref<72x256xf32, #tpu.memory_space<vmem>>, vector<8x256xf32>,
    %c0_16 = arith.constant 0 : index
    %c113 = arith.constant 113 : index
    %35 = vector.load %arg5[%c0_16, %c113] : memref<8x512xf32, #tpu.memory_space<vmem>>, vector<8x256xf32>
    %cst_17 = arith.constant 0.000000e+00 : f32
    %36 = vector.broadcast %cst_17 : f32 to vector<8x256xf32>
    %37 = vector.shape_cast %26 : vector<1x256xi1> to vector<1x256xi1>
    %38 = vector.broadcast %37 : vector<1x256xi1> to vector<8x256xi1>
    %39 = arith.select %38, %35, %36 : vector<8x256xi1>, vector<8x256xf32>
    %c16 = arith.constant 16 : index
    %c0_18 = arith.constant 0 : index
    %40 = vector.load %arg6[%c16, %c0_18] : memref<72x256xf32, #tpu.memory_space<vmem>>, vector<8x256xf32>
    tpu.vector_store %arg6[%c16, %c0_18], %39 {strides = array<i32>} : memref<72x256xf32, #tpu.memory_space<vmem>>, vector<8x256xf32>,
    %c0_19 = arith.constant 0 : index
    %c127 = arith.constant 127 : index
    %41 = vector.load %arg5[%c0_19, %c127] : memref<8x512xf32, #tpu.memory_space<vmem>>, vector<8x256xf32>
    %cst_20 = arith.constant 0.000000e+00 : f32
    %42 = vector.broadcast %cst_20 : f32 to vector<8x256xf32>
    %43 = vector.shape_cast %24 : vector<1x256xi1> to vector<1x256xi1>
    %44 = vector.broadcast %43 : vector<1x256xi1> to vector<8x256xi1>
    %45 = arith.select %44, %41, %42 : vector<8x256xi1>, vector<8x256xf32>
    %c24 = arith.constant 24 : index
    %c0_21 = arith.constant 0 : index
    %46 = vector.load %arg6[%c24, %c0_21] : memref<72x256xf32, #tpu.memory_space<vmem>>, vector<8x256xf32>
    tpu.vector_store %arg6[%c24, %c0_21], %45 {strides = array<i32>} : memref<72x256xf32, #tpu.memory_space<vmem>>, vector<8x256xf32>,
    %c0_22 = arith.constant 0 : index
    %c128_23 = arith.constant 128 : index
    %47 = vector.load %arg5[%c0_22, %c128_23] : memref<8x512xf32, #tpu.memory_space<vmem>>, vector<8x256xf32>
    %c32 = arith.constant 32 : index
    %c0_24 = arith.constant 0 : index
    %48 = vector.load %arg6[%c32, %c0_24] : memref<72x256xf32, #tpu.memory_space<vmem>>, vector<8x256xf32>
    tpu.vector_store %arg6[%c32, %c0_24], %47 {strides = array<i32>} : memref<72x256xf32, #tpu.memory_space<vmem>>, vector<8x256xf32>,
    %c0_25 = arith.constant 0 : index
    %c129 = arith.constant 129 : index
    %49 = vector.load %arg5[%c0_25, %c129] : memref<8x512xf32, #tpu.memory_space<vmem>>, vector<8x256xf32>
    %cst_26 = arith.constant 0.000000e+00 : f32
    %50 = vector.broadcast %cst_26 : f32 to vector<8x256xf32>
    %51 = vector.shape_cast %26 : vector<1x256xi1> to vector<1x256xi1>
    %52 = vector.broadcast %51 : vector<1x256xi1> to vector<8x256xi1>
    %53 = arith.select %52, %49, %50 : vector<8x256xi1>, vector<8x256xf32>
    %c40 = arith.constant 40 : index
    %c0_27 = arith.constant 0 : index
    %54 = vector.load %arg6[%c40, %c0_27] : memref<72x256xf32, #tpu.memory_space<vmem>>, vector<8x256xf32>
    tpu.vector_store %arg6[%c40, %c0_27], %53 {strides = array<i32>} : memref<72x256xf32, #tpu.memory_space<vmem>>, vector<8x256xf32>,
    %c0_28 = arith.constant 0 : index
    %c143 = arith.constant 143 : index
    %55 = vector.load %arg5[%c0_28, %c143] : memref<8x512xf32, #tpu.memory_space<vmem>>, vector<8x256xf32>
    %cst_29 = arith.constant 0.000000e+00 : f32
    %56 = vector.broadcast %cst_29 : f32 to vector<8x256xf32>
    %57 = vector.shape_cast %24 : vector<1x256xi1> to vector<1x256xi1>
    %58 = vector.broadcast %57 : vector<1x256xi1> to vector<8x256xi1>
    %59 = arith.select %58, %55, %56 : vector<8x256xi1>, vector<8x256xf32>
    %c48 = arith.constant 48 : index
    %c0_30 = arith.constant 0 : index
    %60 = vector.load %arg6[%c48, %c0_30] : memref<72x256xf32, #tpu.memory_space<vmem>>, vector<8x256xf32>
    tpu.vector_store %arg6[%c48, %c0_30], %59 {strides = array<i32>} : memref<72x256xf32, #tpu.memory_space<vmem>>, vector<8x256xf32>,
    %c0_31 = arith.constant 0 : index
    %c144 = arith.constant 144 : index
    %61 = vector.load %arg5[%c0_31, %c144] : memref<8x512xf32, #tpu.memory_space<vmem>>, vector<8x256xf32>
    %c56 = arith.constant 56 : index
    %c0_32 = arith.constant 0 : index
    %62 = vector.load %arg6[%c56, %c0_32] : memref<72x256xf32, #tpu.memory_space<vmem>>, vector<8x256xf32>
    tpu.vector_store %arg6[%c56, %c0_32], %61 {strides = array<i32>} : memref<72x256xf32, #tpu.memory_space<vmem>>, vector<8x256xf32>,
    %c0_33 = arith.constant 0 : index
    %c145 = arith.constant 145 : index
    %63 = vector.load %arg5[%c0_33, %c145] : memref<8x512xf32, #tpu.memory_space<vmem>>, vector<8x256xf32>
    %cst_34 = arith.constant 0.000000e+00 : f32
    %64 = vector.broadcast %cst_34 : f32 to vector<8x256xf32>
    %65 = vector.shape_cast %26 : vector<1x256xi1> to vector<1x256xi1>
    %66 = vector.broadcast %65 : vector<1x256xi1> to vector<8x256xi1>
    %67 = arith.select %66, %63, %64 : vector<8x256xi1>, vector<8x256xf32>
    %c64 = arith.constant 64 : index
    %c0_35 = arith.constant 0 : index
    %68 = vector.load %arg6[%c64, %c0_35] : memref<72x256xf32, #tpu.memory_space<vmem>>, vector<8x256xf32>
    tpu.vector_store %arg6[%c64, %c0_35], %67 {strides = array<i32>} : memref<72x256xf32, #tpu.memory_space<vmem>>, vector<8x256xf32>,
    %c0_36 = arith.constant 0 : index
    %c0_37 = arith.constant 0 : index
    %69 = vector.load %arg2[%c0_36, %c0_37] : memref<8x72xf32, #tpu.memory_space<vmem>>, vector<8x72xf32>
    %c0_38 = arith.constant 0 : index
    %c0_39 = arith.constant 0 : index
    %70 = vector.load %arg6[%c0_38, %c0_39] : memref<72x256xf32, #tpu.memory_space<vmem>>, vector<72x256xf32>
    %cst_40 = arith.constant dense<0.000000e+00> : vector<8x256xf32>
    %71 = tpu.matmul %69, %70, %cst_40 {dimension_numbers = #tpu.dot_dimension_numbers<[1], [0], [0], [1], [0, 0, 1, 1], [], []>} : vector<8x72xf32>, vector<72x256xf32>, vector<8x256xf32> -> vector<8x256xf32>
    %cst_41 = arith.constant 0.000000e+00 : f32
    %72 = vector.broadcast %cst_41 : f32 to vector<8x256xf32>
    %73 = arith.cmpf ogt, %71, %72 : vector<8x256xf32>
    %cst_42 = arith.constant 2.000000e-01 : f32
    %74 = vector.broadcast %cst_42 : f32 to vector<8x256xf32>
    %75 = arith.mulf %74, %71 : vector<8x256xf32>
    %76 = arith.select %73, %71, %75 : vector<8x256xi1>, vector<8x256xf32>
    %c0_43 = arith.constant 0 : index
    %c0_44 = arith.constant 0 : index
    %77 = vector.load %arg3[%c0_43, %c0_44] : memref<8x1xf32, #tpu.memory_space<vmem>>, vector<8x1xf32>
    %78 = vector.broadcast %77 : vector<8x1xf32> to vector<8x256xf32>
    %79 = arith.addf %76, %78 : vector<8x256xf32>
    %c0_45 = arith.constant 0 : index
    %c0_46 = arith.constant 0 : index
    %c0_47 = arith.constant 0 : index
    %80 = vector.load %arg4[%c0_45, %c0_46, %c0_47] : memref<1x8x256xf32, #tpu.memory_space<vmem>>, vector<1x8x256xf32>
    %81 = vector.shape_cast %80 : vector<1x8x256xf32> to vector<8x256xf32>
    %82 = vector.shape_cast %79 : vector<8x256xf32> to vector<1x8x256xf32>
    tpu.vector_store %arg4[%c0_45, %c0_46, %c0_47], %82 {strides = array<i32>} : memref<1x8x256xf32, #tpu.memory_space<vmem>>, vector<1x8x256xf32>,
    return
  }
  func.func @transform_0(%arg0: i32) -> (i32, i32, i32) {
    %c0_i32 = arith.constant 0 : i32
    %c0_i32_0 = arith.constant 0 : i32
    %c0_i32_1 = arith.constant 0 : i32
    return %arg0, %c0_i32, %c0_i32_0 : i32, i32, i32
  }
  func.func @transform_1(%arg0: i32) -> (i32, i32) {
    %c0_i32 = arith.constant 0 : i32
    %c0_i32_0 = arith.constant 0 : i32
    %c0_i32_1 = arith.constant 0 : i32
    return %c0_i32, %c0_i32_0 : i32, i32
  }
  func.func @transform_2(%arg0: i32) -> (i32, i32) {
    %c0_i32 = arith.constant 0 : i32
    %c0_i32_0 = arith.constant 0 : i32
    %c0_i32_1 = arith.constant 0 : i32
    return %c0_i32, %c0_i32_0 : i32, i32
  }
  func.func @transform_3(%arg0: i32) -> (i32, i32, i32) {
    %c0_i32 = arith.constant 0 : i32
    %c0_i32_0 = arith.constant 0 : i32
    %c0_i32_1 = arith.constant 0 : i32
    return %arg0, %c0_i32, %c0_i32_0 : i32, i32, i32
  }
}

</mosaic_0001>

<bundles_post_ra>
// kernel: tpu_custom_call.1
= control target key start
LH: loop header
LB: loop body
LE: loop exit
PB: predicated region body
PF: predicated region fallthrough
CT: control target
= control target key end

     0   :  { %8 = vsyncpa [#allocation5], 0  ;;  %s1118_s0 = inlined_call_operand.hbm [shape: f32[2,8,256], index: 0, kind: input, shape index: {}]   ;;  %s1119_s1 = inlined_call_operand.vmem [shape: f32[8,72], index: 1, kind: input, shape index: {}]   ;;  %s1120_s2 = inlined_call_operand.vmem [shape: f32[8,1], index: 2, kind: input, shape index: {}]   ;;  %s1121_s3 = inlined_call_operand.hbm [shape: f32[2,8,256], index: 3, kind: output, shape index: {}]  }
   0x1   :  { %10 = vsyncpa [#allocation5 + $0x1], 0 }
   0x2   :  { %11 = vsyncpa [#allocation6], 0 }
   0x3   :  { %13 = vsyncpa [#allocation6 + $0x1], 0  ;;  %s873_s12 = smov 0   ;;  %s875_s13 = smov 0  }
   0x4   :  { %s877_s14 = smov 0   ;;  %s879_s15 = smov 0  }
   0x5 LB: > { %s894_s16 = sadd.s32 4294967295, %s838_s15   ;;  %s595_s17 = sadd.s32 4294967294, %s838_s15   ;;  %s838_s15 = sphi %s879_s15, %s1148_s15   ;;  %s834_s14 = sphi %s877_s14, %s1147_s14   ;;  %s830_s13 = sphi %s875_s13, %s1146_s13   ;;  %s826_s12 = sphi %s873_s12, %s1145_s12  }
   0x6   : > { %s898_s18 = sadd.s32 1, %s838_s15   ;;  %s26_s19 = sadd.s32 1, %s834_s14 }
   0x7   : > { %s23_s20 = ssub.s32 %s838_s15, %s898_s18  ;;  %p33_p0 = scmp.ne.s32.totalorder %s834_s14, %s830_s13 }
   0x8   : > { %p24_p1 = scmp.eq.s32.totalorder %s23_s20, 0  ;;  %p34_p2 = scmp.eq.s32.totalorder %s838_s15, 0 }
   0x9   : > { %p39_p3 = scmp.ne.s32.totalorder %s830_s13, %s826_s12  ;;  %p40_p4 = scmp.eq.s32.totalorder %s894_s16, 0 }
   0xa   : > { %s910_s21 = scalar_select %p24_p1, %s834_s14, %s26_s19  }
   0xb   : > { %p912_p5 = por %p34_p2, %p33_p0  ;;  %p916_p6 = por %p40_p4, %p39_p3 }
   0xc   : > { %p105_p7 = scmp.eq.s32.totalorder %s894_s16, 1  ;;  %p111_p8 = scmp.eq.s32.totalorder %s595_s17, 1 }
   0xd   : > { %p660_p10 = scmp.lt.s32.totalorder %s838_s15, 2  ;;  %s137_s26 = sand.u32 1, %s834_s14  }
   0xe   : > { %p923_p11 = por %p105_p7, %p33_p0  ;;  %p927_p12 = por %p111_p8, %p39_p3 }
   0xf   : > { %s610_s27 = sshll.u32 %s838_s15, 8  ;;  %s598_s28 = sshll.u32 %s137_s26, 4 }
  0x10   : > { %s1125_s24 = scalar_select %p923_p11, 1, 0 }
  0x11   : > { %s1126_s25 = scalar_select %p927_p12, 1, 0 }
  0x12   : > { %s936_s4 = scalar_lea.hbm %s1118_s0, %s610_s27  ;;  %s141_s5 = scalar_lea.vmem [#allocation4], %s598_s28 }
  0x13   : > { %s149_s6 = sshll.u32 %s141_s5, 4  ;;  %p940_p13 = pnand %p660_p10, %p912_p5  ;;  %s944_s6 = int_to_ptr.vmem [resolvable:$true] %s149_s6 }
  0x14   : > { %s138_s8 = scalar_lea.sflag [#allocation5], %s137_s26  ;;  %s742_s9 = scalar_lea.hbm %s936_s4, 256 }
  0x15   : > { %p743_p2 = scmp.ne.s32.totalorder %s936_s4, %s742_s9  ;;  %p744_p3 = pneg %p940_p13 }
  0x16   : > { %s747_s17 = scalar_lea.hbm %s1118_s0, 512  ;;  %p748_p5 = scmp.lt.u32.totalorder %s936_s4, %s1118_s0 }
  0x17   : > { %p745_p4 = pnand %p744_p3, %p743_p2  ;;  %p749_p8 = scmp.lt.u32.totalorder %s747_s17, %s742_s9 }
  0x18   : > { %p751_p9 = scmp.lt.u32.totalorder %s742_s9, %s936_s4 }
  0x19   : > { %p746_p7 = pneg %p745_p4  ;;  %p750_p10 = por %p749_p8, %p748_p5 }
  0x1b   : > { %p752_p0 = por %p751_p9, %p750_p10 }
  0x1d   : > { %p753_p1 = pnand %p752_p0, %p746_p7 }
  0x1f   : > { %756 = shalt.err (!%p753_p1)
}
  0x20   : > { %s757_s22 = scalar_lea.vmem %s944_s6, 256  ;;  %s840_s26 = smov [#allocation4]  }
  0x21   : > { %p758_p2 = scmp.ne.s32.totalorder %s944_s6, %s757_s22  ;;  %s762_s27 = sshll.u32 %s840_s26, 4  ;;  %s763_s27 = int_to_ptr.vmem [resolvable:$false] %s762_s27 }
  0x22   : > { %s764_s28 = scalar_lea.vmem %s763_s27, 512  ;;  %p765_p11 = scmp.lt.s32.totalorder %s944_s6, %s763_s27 }
  0x23   : > { %p760_p4 = pnand %p758_p2, %p744_p3  ;;  %p766_p5 = scmp.lt.s32.totalorder %s764_s28, %s757_s22 }
  0x25   : > { %p761_p12 = pneg %p760_p4  ;;  %p767_p8 = por %p766_p5, %p765_p11 }
  0x27   : > { %p768_p9 = pnand %p767_p8, %p761_p12 }
  0x29   : > { %771 = shalt.err (!%p768_p9)
}
  0x2a   : > { %655 = dma.hbm_to_vmem [thread:$0]  (!%p940_p13), %s936_s4, 256, %s944_s6, %s138_s8  }
  0x2b   : > { %p1128_p0 = scmp.lt.s32.totalorder %s838_s15, 3  ;;  %p1129_p1 = scmp.ge.s32.totalorder %s838_s15, 1 }
  0x2d   : > { %p155_p3 = pnand %p1129_p1, %p1128_p0 }
  0x2e   : > { %s978_s29 = sand.u32 (!%p155_p3), 1, %s830_s13  }
  0x2f   : > { %158 = sbr.rel (%p155_p3) target bundleno = 439 (0x1b7), region = 32  ;;  %s602_s30 = sshll.u32 (!%p155_p3), %s978_s29, 4 }
  0x30   : > { %s161_s5 = scalar_lea.sflag (!%p155_p3), [#allocation5], %s978_s29  ;;  %s164_s7 = scalar_lea.vmem (!%p155_p3), [#allocation4], %s602_s30 }
  0x36   : > { %817 = dma.done.wait (%p916_p6), %s161_s5, 256  }
  0x37   : > { %819 = vsyncadd (%p916_p6), %s161_s5, 4294967040  ;;  %v841_v0 = vmov 0.0   ;;  %s842_s4 = smov 17   ;;  %s843_s6 = smov 16   ;;  %v988_v1 = vld [vmem:[%s164_s7] sm:$0xff]  ;;  %v990_v2 = vld [vmem:[%s164_s7 + $0x8] sm:$0xff]  ;;  %v193_v7 = vlaneseq }
  0x38   : > { %234 = vrot.lane.b32.xlu1 %v841_v0, %s842_s4  ;;  %487 = vmatprep.mubr.f32.mxu0 %v841_v0  ;;  %v705_v3 = vpack.i.bf16 %v990_v2, %v988_v1  ;;  %s844_s8 = smov 1   ;;  %s845_s23 = smov 15   ;;  %v735_v4 = vpack.i.bf16 %v841_v0, %v990_v2  ;;  %v500_v5 = vld [vmem:[%s1120_s2] sm:$0xff]  ;;  %v850_v6 = vmov 0   ;;  %vm240_vm0 = vcmask 138240  }
  0x39   : > { %s846_s9 = smov 127   ;;  %s847_s10 = smov 112   ;;  %740 = vset.pattern.permute.xlu1 %v850_v6  ;;  %741 = vset.pattern.permute.xlu0 %v850_v6  ;;  %v194_v9 = vand.u32 127, %v193_v7  ;;  %vm261_vm2 = vcmask 130048   ;;  %vm305_vm4 = vcmask 7168   ;;  %vm851_vm5 = vmmov 1  }
  0x3a   : > { %706 = vrot.lane.b32.xlu0 %v705_v3, %s842_s4  ;;  %s848_s11 = smov 113   ;;  %s849_s17 = smov 111   ;;  %vm284_vm9 = vcmask 121856   ;;  %vm330_vm13 = vcmask 1039360   ;;  %vm372_vm14 = vcmask 916480  }
  0x3b   : > { %v195_v11 = vadd.s32 128, %v194_v9  ;;  %v200_v15 = vand.u32 15, %v194_v9  ;;  %s611_s27 = sshll.u32 %s894_s16, 8  ;;  %s186_s28 = scalar_lea.vmem [#allocation7], %s602_s30 }
  0x3c   : > { %255 = vrot.lane.b32.xlu1 %v841_v0, %s843_s6  ;;  %s525_s5 = sshll.u32 %s186_s28, 4  ;;  %s511_s16 = scalar_lea.sflag [#allocation6], %s978_s29  ;;  %s1076_s5 = int_to_ptr.vmem [resolvable:$true] %s525_s5 }
  0x3d   : > { %v207_v14 = vand.u32 15, %v195_v11  ;;  %vm1007_vm3 = vcmp.ge.s32.totalorder %v200_v15, 1  ;;  %vm1034_vm10 = vcmp.lt.s32.totalorder %v200_v15, 15  ;;  %p1142_p11 = scmp.ne.s32.totalorder %s1125_s24, 0  ;;  %s852_s30 = smov [#allocation7]  }
  0x3e   : > { %711 = vrot.lane.b32.xlu0 %v705_v3, %s843_s6  ;;  %vm1027_vm8 = vmpackc.low %vm851_vm5, %vm1007_vm3  ;;  %s1074_s6 = scalar_lea.hbm %s1121_s3, %s611_s27 }
  0x3f   : > { %vm1003_vm1 = vcmp.ge.s32.totalorder %v207_v14, 1  ;;  %vm1020_vm7 = vcmp.lt.s32.totalorder %v207_v14, 15  ;;  %vm634_vm12 = vmpackc.low %vm1007_vm3, %vm1034_vm10  ;;  %vm419_vm3 = vcmask 588800  }
  0x40   : > { %721 = vrot.lane.b32.xlu1 %v705_v3, %s844_s8  ;;  %vm1015_vm6 = vmpackc.low %vm851_vm5, %vm1003_vm1 }
  0x41   : > { %vm631_vm11 = vmpackc.low %vm1003_vm1, %vm1020_vm7  ;;  %vm351_vm1 = vcmask 924672  }
  0x42   : > { %716 = vrot.lane.b32.xlu0 %v705_v3, %s845_s23  ;;  %vm637_vm15 = vmpackc.low %vm1020_vm7, %vm851_vm5 }
  0x44   : > { %299 = vrot.lane.b32.xlu1 %v841_v0, %s844_s8  ;;  %s772_s8 = scalar_lea.vmem %s1076_s5, 256 }
  0x45   : > { %p773_p6 = scmp.ne.s32.totalorder %s1076_s5, %s772_s8 }
  0x46   : > { %278 = vrot.lane.b32.xlu0 %v841_v0, %s845_s23  ;;  %s776_s23 = sshll.u32 %s852_s30, 4  ;;  %s777_s23 = int_to_ptr.vmem [resolvable:$false] %s776_s23 }
  0x47   : > { %p774_p12 = pnand %p773_p6, %p1142_p11  ;;  %p779_p7 = scmp.lt.s32.totalorder %s1076_s5, %s777_s23 }
  0x48   : > { %324 = vrot.lane.b32.xlu1 %v988_v1, %s846_s9 }
  0x49   : > { %p775_p13 = pneg %p774_p12 }
  0x4a   : > { %726 = vrot.lane.b32.xlu0 %v735_v4, %s846_s9  ;;  %s778_s9 = scalar_lea.vmem %s777_s23, 512 }
  0x4b   : > { %p780_p10 = scmp.lt.s32.totalorder %s778_s9, %s772_s8 }
  0x4c   : > { %736 = vrot.lane.b32.xlu1 %v735_v4, %s847_s10 }
  0x4d   : > { %p781_p2 = por %p780_p10, %p779_p7 }
  0x4e   : > { %731 = vrot.lane.b32.xlu0 %v735_v4, %s848_s11 }
  0x4f   : > { %p782_p4 = pnand %p781_p2, %p775_p13 }
  0x50   : > { %366 = vrot.lane.b32.xlu1 %v988_v1, %s847_s10 }
  0x52   : > { %345 = vrot.lane.b32.xlu0 %v988_v1, %s848_s11 }
  0x54   : > { %389 = vrot.lane.b32.xlu1 %v841_v0, %s849_s17 }
  0x56   : > { %387 = vrot.lane.b32.xlu0 %v990_v2, %s849_s17 }
  0x58   : > { %503 = vperm.xlu1 %740, %v500_v5  }
  0x5a   : > { %385 = vrot.lane.b32.xlu0 %v988_v1, %s849_s17 }
  0xaa   : > { %v235_v8 = vpop.permute.xlu1 %234 }
  0xac   : > { %v707_v12 = vpop.permute.xlu0 %706 }
  0xad   : > { %v709_v16 = vunpack.i.h.bf16 %v707_v12  ;;  %v708_v17 = vunpack.i.l.bf16 %v707_v12 }
  0xae   : > { %v256_v10 = vpop.permute.xlu1 %255 }
  0xaf   : > { %v242_v26 = vsel %vm240_vm0, %v708_v17, %v709_v16  ;;  %v241_v29 = vsel %vm240_vm0, %v235_v8, %v708_v17  ;;  %vm640_vm0 = vmpackc.low %vm1034_vm10, %vm851_vm5  ;;  %v400_v8 = vld [vmem:[%s1119_s1] sm:$0xff] }
  0xb0   : > { %v712_v18 = vpop.permute.xlu0 %711 }
  0xb1   : > { %v714_v22 = vunpack.i.h.bf16 %v712_v18  ;;  %v713_v23 = vunpack.i.l.bf16 %v712_v18 }
  0xb2   : > { %v722_v13 = vpop.permute.xlu1 %721 }
  0xb3   : > { %v724_v24 = vunpack.i.h.bf16 %v722_v13  ;;  %v723_v25 = vunpack.i.l.bf16 %v722_v13  ;;  %v263_v27 = vsel %vm261_vm2, %v713_v23, %v714_v22  ;;  %v262_v30 = vsel %vm261_vm2, %v256_v10, %v713_v23 }
  0xb4   : > { %v717_v31 = vpop.permute.xlu0 %716  ;;  %v624_v33 = vpack.c.bf16 %v263_v27, %v242_v26  ;;  %v627_v34 = vpack.c.bf16 %v262_v30, %v241_v29  ;;  %vm391_vm2 = vcmask 908288  }
  0xb5   : > { %v719_v37 = vunpack.i.h.bf16 %v717_v31  ;;  %v718_v38 = vunpack.i.l.bf16 %v717_v31  ;;  %v307_v39 = vsel %vm305_vm4, %v723_v25, %v724_v24 }
  0xb6   : > { %v300_v21 = vpop.permute.xlu1 %299  ;;  %626 = vmatprep.subr.msk.bf16.mxu0 %vm1015_vm6, %v624_v33 }
  0xb7   : > { %629 = vmatpush1.bf16.msk.msra.mxu0 %vm1027_vm8, %v627_v34  ;;  %v306_v41 = vsel %vm305_vm4, %v300_v21, %v723_v25  ;;  %v286_v42 = vsel %vm284_vm9, %v718_v38, %v719_v37 }
  0xb8   : > { %v279_v43 = vpop.permute.xlu0 %278  ;;  %v630_v44 = vpack.c.bf16 %v307_v39, %v286_v42 }
  0xb9   : > { %v285_v45 = vsel %vm284_vm9, %v279_v43, %v718_v38 }
  0xba   : > { %v325_v36 = vpop.permute.xlu1 %324  ;;  %v633_v46 = vpack.c.bf16 %v306_v41, %v285_v45  ;;  %632 = vmatprep.subr.msk.bf16.mxu0 %vm631_vm11, %v630_v44 }
  0xbc   : > { %v727_v48 = vpop.permute.xlu0 %726  ;;  %635 = vmatpush1.bf16.msk.msra.mxu0 %vm634_vm12, %v633_v46 }
  0xbd   : > { %v729_v49 = vunpack.i.h.bf16 %v727_v48  ;;  %v728_v50 = vunpack.i.l.bf16 %v727_v48 }
  0xbe   : > { %v737_v47 = vpop.permute.xlu1 %736 }
  0xbf   : > { %v739_v51 = vunpack.i.h.bf16 %v737_v47  ;;  %v738_v52 = vunpack.i.l.bf16 %v737_v47  ;;  %v331_v53 = vsel %vm330_vm13, %v325_v36, %v728_v50  ;;  %v332_v54 = vsel %vm330_vm13, %v728_v50, %v729_v49 }
  0xc0   : > { %v636_v55 = vpack.c.bf16 %v332_v54, %v990_v2  ;;  %v639_v56 = vpack.c.bf16 %v331_v53, %v988_v1  ;;  %v732_v57 = vpop.permute.xlu0 %731 }
  0xc1   : > { %v734_v59 = vunpack.i.h.bf16 %v732_v57  ;;  %v733_v60 = vunpack.i.l.bf16 %v732_v57  ;;  %v374_v61 = vsel %vm372_vm14, %v738_v52, %v739_v51 }
  0xc2   : > { %v367_v58 = vpop.permute.xlu1 %366  ;;  %638 = vmatprep.subr.msk.bf16.mxu0 %vm637_vm15, %v636_v55 }
  0xc3   : > { %641 = vmatpush1.bf16.msk.msra.mxu0 %vm640_vm0, %v639_v56  ;;  %v373_v62 = vsel %vm372_vm14, %v367_v58, %v738_v52  ;;  %v353_v63 = vsel %vm351_vm1, %v733_v60, %v734_v59 }
  0xc4   : > { %v346_v0 = vpop.permute.xlu0 %345  ;;  %v642_v3 = vpack.c.bf16 %v374_v61, %v353_v63 }
  0xc5   : > { %v352_v4 = vsel %vm351_vm1, %v346_v0, %v733_v60 }
  0xc6   : > { %v645_v2 = vpack.c.bf16 %v373_v62, %v352_v4  ;;  %644 = vmatprep.subr.msk.bf16.mxu0 %vm1015_vm6, %v642_v3  ;;  %v390_v1 = vpop.permute.xlu1 %389 }
  0xc8   : > { %v388_v5 = vpop.permute.xlu0 %387  ;;  %647 = vmatpush1.bf16.msk.msra.mxu0 %vm1027_vm8, %v645_v2 }
  0xc9   : > { %v393_v6 = vsel %vm391_vm2, %v388_v5, %v390_v1 }
  0xca   : > { %622 = vmatprep.subr.msk.mxu0 %vm1020_vm7, %v393_v6 }
  0xcc   : > { %v386_v7 = vpop.permute.xlu0 %385 }
  0xcd   : > { %v392_v9 = vsel %vm391_vm2, %v386_v7, %v388_v5 }
  0xce   : > { %623 = vmatpush1.msk.msra.mxu0 %vm1034_vm10, %v392_v9 }
  0xcf   : > { %604 = vmatmul.mubr.msk.f32.vlgmr.msra.gmra.mrb[0].mxu0 %vm419_vm3, %v400_v8 }
  0xd7   : > { %v504_v13 = vpop.permute.xlu1 %503 }
 0x1a2   : > { %v489_v10 = vpop.f32.mrb[0].mxu0 }
 0x1a3   : > { %vm494_vm4 = vcmp.gt.f32.partialorder %v489_v10, 0.0  ;;  %v496_v11 = vmul.f32 0.2, %v489_v10  ;;  %v491_v12 = vpop.f32.mrb[1].mxu0 }
 0x1a4   : > { %vm495_vm5 = vcmp.gt.f32.partialorder %v491_v12, 0.0  ;;  %v497_v14 = vmul.f32 0.2, %v491_v12 }
 0x1a5   : > { %v498_v15 = vsel %vm494_vm4, %v489_v10, %v496_v11 }
 0x1a6   : > { %v499_v16 = vsel %vm495_vm5, %v491_v12, %v497_v14  ;;  %v506_v17 = vadd.f32 %v504_v13, %v498_v15 }
 0x1a7   : > { %v507_v18 = vadd.f32 %v504_v13, %v499_v16 }
 0x1a8   : > { %508 = vst [vmem:[%s186_s28] sm:$0xff] %v506_v17 }
 0x1a9   : > { %509 = vst [vmem:[%s186_s28 + $0x8] sm:$0xff] %v507_v18 }
 0x1aa   : > { %785 = shalt.err (!%p782_p4)
}
 0x1ab   : > { %s786_s29 = scalar_lea.hbm %s1074_s6, 256  ;;  %s790_s17 = scalar_lea.hbm %s1121_s3, 512 }
 0x1ac   : > { %p787_p5 = scmp.ne.s32.totalorder %s1074_s6, %s786_s29  ;;  %p791_p0 = scmp.lt.u32.totalorder %s1074_s6, %s1121_s3 }
 0x1ad   : > { %p792_p1 = scmp.lt.u32.totalorder %s790_s17, %s786_s29  ;;  %p794_p6 = scmp.lt.u32.totalorder %s786_s29, %s1074_s6 }
 0x1ae   : > { %p788_p8 = pnand %p787_p5, %p1142_p11 }
 0x1af   : > { %p793_p3 = por %p792_p1, %p791_p0 }
 0x1b0   : > { %p789_p9 = pneg %p788_p8 }
 0x1b1   : > { %p795_p12 = por %p794_p6, %p793_p3 }
 0x1b3   : > { %p796_p13 = pnand %p795_p12, %p789_p9 }
 0x1b5   : > { %799 = shalt.err (!%p796_p13)
}
 0x1b6   : > { %650 = dma.vmem_to_hbm [thread:$0]  (%p1142_p11), %s1076_s5, 256, %s1074_s6, %s511_s16  }
 0x1b7 PF: > { %s537_s22 = sand.u32 1, %s826_s12   ;;  %p1143_p7 = scmp.ne.s32.totalorder %s1126_s25, 0 }
 0x1b8   : > { %p1144_p10 = scmp.ge.s32.totalorder %s838_s15, 2  ;;  %s538_s26 = scalar_lea.sflag [#allocation6], %s537_s22 }
 0x1ba   : > { %p657_p2 = pnand %p1144_p10, %p1143_p7 }
 0x1bc   : > { %821 = dma.done.wait (!%p657_p2), %s538_s26, 256  }
 0x1bd   : > { %823 = vsyncadd (!%p657_p2), %s538_s26, 4294967040  ;;  %p16_p4 = scmp.ge.s32.totalorder %s898_s18, 4   ;;  %s1145_s12 = smov %s830_s13 }
 0x1be   : > { %s1146_s13 = smov %s834_s14  ;;  %s1147_s14 = smov %s910_s21 }
 0x1bf   : > { %s1148_s15 = smov %s898_s18  ;;  %18 = sbr.rel (!%p16_p4) target bundleno = 5 (0x5), region = 77 }
 0x1c6   :  { %543 = vsyncpa [#allocation5], 1 }
 0x1c7   :  { %545 = vsyncpa [#allocation5 + $0x1], 1 }
 0x1c8   :  { %546 = vsyncpa [#allocation6], 1 }
 0x1c9   :  { %548 = vsyncpa [#allocation6 + $0x1], 1 }

</bundles_post_ra>
